<compile_context>
chip_gen: v6e
topology: v6e:2x2x1
jax: 0.10.0
libtpu: 0.0.40
codegen_flags: <defaults>
</compile_context>

<pallas_src>
import jax
import jax.numpy as jnp
from jax.experimental import pallas as pl
from jax.experimental.pallas import tpu as pltpu

IN_DIM = 3
HID_DIM = 10
OUT_DIM = 3


def _round_up(x, m):
    return (x + m - 1) // m * m


def _cdiv(a, b):
    return (a + b - 1) // b


def mlp_kernel(x_ref, w1_ref, b1_ref, w2_ref, b2_ref, w3_ref, b3_ref, o_ref):
    """One batch tile: x^T (3, bm) -> o^T (3, bm), all f32, MXU matmuls."""
    x = x_ref[...]                                                   # (3,  bm)

    h = jnp.dot(w1_ref[...], x, preferred_element_type=jnp.float32)  # (10, bm)
    h = jnp.maximum(h + b1_ref[...], 0.0)

    h = jnp.dot(w2_ref[...], h, preferred_element_type=jnp.float32)  # (10, bm)
    h = jnp.maximum(h + b2_ref[...], 0.0)

    o = jnp.dot(w3_ref[...], h, preferred_element_type=jnp.float32)  # (3,  bm)
    o = o + b3_ref[...]
    o_ref[...] = o.astype(o_ref.dtype)


def net_forward_t(xt, params, *, bm=131072):
    """Fast path: feature-major in/out.

    xt: (3, B) float32 (batch on the lane axis).  Returns (3, B) float32.
    No wrapper-side pad or transpose copies.
    """
    B = int(xt.shape[1])
    xt = xt.astype(jnp.float32)

    # Lane tile: multiple of 128, at most ceil(B/2) (keeps >=2 grid steps for
    # the two v7x TensorCores whenever B > 128), at most the requested bm.
    half = _round_up(_cdiv(B, 2), 128) if B > 128 else 128
    bm_eff = max(128, min(_round_up(bm, 128), half))
    grid = (_cdiv(B, bm_eff),)   # ragged last block handled by boundary masking

    # Parameters as f32, biases column-shaped so they broadcast along lanes.
    w1 = params["w1"].astype(jnp.float32)                  # (10, 3)
    b1 = params["b1"].astype(jnp.float32).reshape(HID_DIM, 1)
    w2 = params["w2"].astype(jnp.float32)                  # (10, 10)
    b2 = params["b2"].astype(jnp.float32).reshape(HID_DIM, 1)
    w3 = params["w3"].astype(jnp.float32)                  # (3, 10)
    b3 = params["b3"].astype(jnp.float32).reshape(OUT_DIM, 1)

    # Per-step VMEM: ~128 B/lane (double-buffered (3,bm) in/out + f32 hiddens).
    # Only raise the limit above the 32 MiB scoped default when a user-supplied
    # bm actually needs it; cap at 96 MiB (fine on v5e/v6e's 128 MiB VMEM --
    # do not push huge tiles on v7x, which has 64 MiB physical VMEM).
    vmem_need = 160 * bm_eff + (1 << 20)
    vmem_limit = int(max(32 * 1024 * 1024, min(96 * 1024 * 1024, vmem_need)))

    const = lambda i: (0, 0)  # weights/biases: same (only) block every step
    return pl.pallas_call(
        mlp_kernel,
        out_shape=jax.ShapeDtypeStruct((OUT_DIM, B), jnp.float32),
        grid_spec=pltpu.PrefetchScalarGridSpec(
            num_scalar_prefetch=0,
            grid=grid,
            in_specs=[
                pl.BlockSpec((IN_DIM, bm_eff), lambda i: (0, i)),   # x^T tile
                pl.BlockSpec((HID_DIM, IN_DIM), const),             # w1
                pl.BlockSpec((HID_DIM, 1), const),                  # b1
                pl.BlockSpec((HID_DIM, HID_DIM), const),            # w2
                pl.BlockSpec((HID_DIM, 1), const),                  # b2
                pl.BlockSpec((OUT_DIM, HID_DIM), const),            # w3
                pl.BlockSpec((OUT_DIM, 1), const),                  # b3
            ],
            out_specs=pl.BlockSpec((OUT_DIM, bm_eff), lambda i: (0, i)),
        ),
        compiler_params=pltpu.CompilerParams(
            dimension_semantics=("parallel",),
            vmem_limit_bytes=vmem_limit,
        ),
    )(xt, w1, b1, w2, b2, w3, b3)


def net_forward(x, params, *, bm=131072):
    """PyTorch-compatible interface: x (B, 3) float32 -> (B, 3) float32.

    NOTE: the two transposes below are XLA HBM round-trips around the kernel;
    feature-major pipelines should call net_forward_t directly to avoid them.
    """
    out_t = net_forward_t(x.astype(jnp.float32).T, params, bm=bm)
    return out_t.T


def init_params(key):
    """Matches the PyTorch module's init, weights in (out, in) layout:
    - hid1 / hid2 weights: xavier_uniform_
    - oupt weight + all biases: PyTorch Linear default uniform(+-1/sqrt(fan_in))
    """
    ks = jax.random.split(key, 6)

    def xavier(k, fan_out, fan_in):
        bound = (6.0 / (fan_in + fan_out)) ** 0.5
        return jax.random.uniform(k, (fan_out, fan_in), jnp.float32, -bound, bound)

    def default_w(k, fan_out, fan_in):
        bound = 1.0 / (fan_in ** 0.5)
        return jax.random.uniform(k, (fan_out, fan_in), jnp.float32, -bound, bound)

    def default_b(k, fan_out, fan_in):
        bound = 1.0 / (fan_in ** 0.5)
        return jax.random.uniform(k, (fan_out,), jnp.float32, -bound, bound)

    return {
        "w1": xavier(ks[0], HID_DIM, IN_DIM),       # (10, 3)
        "b1": default_b(ks[1], HID_DIM, IN_DIM),    # (10,)
        "w2": xavier(ks[2], HID_DIM, HID_DIM),      # (10, 10)
        "b2": default_b(ks[3], HID_DIM, HID_DIM),   # (10,)
        "w3": default_w(ks[4], OUT_DIM, HID_DIM),   # (3, 10)
        "b3": default_b(ks[5], OUT_DIM, HID_DIM),   # (3,)
    }


def net_forward_ref(x, p):
    z = jnp.maximum(x @ p["w1"].T + p["b1"], 0.0)
    z = jnp.maximum(z @ p["w2"].T + p["b2"], 0.0)
    return z @ p["w3"].T + p["b3"]


if __name__ == "__main__":
    key = jax.random.PRNGKey(0)
    k_param, k_x = jax.random.split(key)

    params = init_params(k_param)
    B = 200  # not a multiple of 128: exercises ragged-last-block masking
    x = jax.random.normal(k_x, (B, IN_DIM), dtype=jnp.float32)
    ref = net_forward_ref(x, params)

    # PyTorch-compatible (B, 3) path.
    out = jax.block_until_ready(net_forward(x, params))
    assert out.shape == (B, OUT_DIM)
    assert jnp.allclose(out, ref, atol=1e-5, rtol=1e-5)

    # Feature-major fast path (no wrapper copies).
    out_t = jax.block_until_ready(net_forward_t(x.T, params))
    assert out_t.shape == (OUT_DIM, B)
    assert jnp.allclose(out_t.T, ref, atol=1e-5, rtol=1e-5)

    print("KERNEL_OK")
</pallas_src>

<mosaic_0001>
module attributes {stable_mosaic.version = 11 : i64} {
  func.func @mlp_kernel(%arg0: i32, %arg1: memref<3x128xf32, #tpu.memory_space<vmem>>, %arg2: memref<10x3xf32, #tpu.memory_space<vmem>>, %arg3: memref<10x1xf32, #tpu.memory_space<vmem>>, %arg4: memref<10x10xf32, #tpu.memory_space<vmem>>, %arg5: memref<10x1xf32, #tpu.memory_space<vmem>>, %arg6: memref<3x10xf32, #tpu.memory_space<vmem>>, %arg7: memref<3x1xf32, #tpu.memory_space<vmem>>, %arg8: memref<3x128xf32, #tpu.memory_space<vmem>>) attributes {dimension_semantics = [#tpu.dimension_semantics<parallel>], iteration_bounds = array<i64: 2>, scalar_prefetch = 0 : i64, scratch_operands = 0 : i64, tpu.core_type = #tpu.core_type<tc>, window_params = [{transform_indices = @transform_0, window_bounds = array<i64: 3, 128>}, {pipeline_mode = #tpu.pipeline_mode<synchronous>, transform_indices = @transform_1, window_bounds = array<i64: 10, 3>}, {pipeline_mode = #tpu.pipeline_mode<synchronous>, transform_indices = @transform_2, window_bounds = array<i64: 10, 1>}, {pipeline_mode = #tpu.pipeline_mode<synchronous>, transform_indices = @transform_3, window_bounds = array<i64: 10, 10>}, {pipeline_mode = #tpu.pipeline_mode<synchronous>, transform_indices = @transform_4, window_bounds = array<i64: 10, 1>}, {pipeline_mode = #tpu.pipeline_mode<synchronous>, transform_indices = @transform_5, window_bounds = array<i64: 3, 10>}, {pipeline_mode = #tpu.pipeline_mode<synchronous>, transform_indices = @transform_6, window_bounds = array<i64: 3, 1>}, {transform_indices = @transform_7, window_bounds = array<i64: 3, 128>}]} {
    %c0 = arith.constant 0 : index
    %c0_0 = arith.constant 0 : index
    %0 = vector.load %arg1[%c0, %c0_0] : memref<3x128xf32, #tpu.memory_space<vmem>>, vector<3x128xf32>
    %c0_1 = arith.constant 0 : index
    %c0_2 = arith.constant 0 : index
    %1 = vector.load %arg2[%c0_1, %c0_2] : memref<10x3xf32, #tpu.memory_space<vmem>>, vector<10x3xf32>
    %cst = arith.constant dense<0.000000e+00> : vector<10x128xf32>
    %2 = tpu.matmul %1, %0, %cst {dimension_numbers = #tpu.dot_dimension_numbers<[1], [0], [0], [1], [0, 0, 1, 1], [], []>} : vector<10x3xf32>, vector<3x128xf32>, vector<10x128xf32> -> vector<10x128xf32>
    %c0_3 = arith.constant 0 : index
    %c0_4 = arith.constant 0 : index
    %3 = vector.load %arg3[%c0_3, %c0_4] : memref<10x1xf32, #tpu.memory_space<vmem>>, vector<10x1xf32>
    %4 = vector.broadcast %3 : vector<10x1xf32> to vector<10x128xf32>
    %5 = arith.addf %2, %4 : vector<10x128xf32>
    %cst_5 = arith.constant 0.000000e+00 : f32
    %6 = vector.broadcast %cst_5 : f32 to vector<10x128xf32>
    %7 = arith.maximumf %5, %6 : vector<10x128xf32>
    %c0_6 = arith.constant 0 : index
    %c0_7 = arith.constant 0 : index
    %8 = vector.load %arg4[%c0_6, %c0_7] : memref<10x10xf32, #tpu.memory_space<vmem>>, vector<10x10xf32>
    %cst_8 = arith.constant dense<0.000000e+00> : vector<10x128xf32>
    %9 = tpu.matmul %8, %7, %cst_8 {dimension_numbers = #tpu.dot_dimension_numbers<[1], [0], [0], [1], [0, 0, 1, 1], [], []>} : vector<10x10xf32>, vector<10x128xf32>, vector<10x128xf32> -> vector<10x128xf32>
    %c0_9 = arith.constant 0 : index
    %c0_10 = arith.constant 0 : index
    %10 = vector.load %arg5[%c0_9, %c0_10] : memref<10x1xf32, #tpu.memory_space<vmem>>, vector<10x1xf32>
    %11 = vector.broadcast %10 : vector<10x1xf32> to vector<10x128xf32>
    %12 = arith.addf %9, %11 : vector<10x128xf32>
    %cst_11 = arith.constant 0.000000e+00 : f32
    %13 = vector.broadcast %cst_11 : f32 to vector<10x128xf32>
    %14 = arith.maximumf %12, %13 : vector<10x128xf32>
    %c0_12 = arith.constant 0 : index
    %c0_13 = arith.constant 0 : index
    %15 = vector.load %arg6[%c0_12, %c0_13] : memref<3x10xf32, #tpu.memory_space<vmem>>, vector<3x10xf32>
    %cst_14 = arith.constant dense<0.000000e+00> : vector<3x128xf32>
    %16 = tpu.matmul %15, %14, %cst_14 {dimension_numbers = #tpu.dot_dimension_numbers<[1], [0], [0], [1], [0, 0, 1, 1], [], []>} : vector<3x10xf32>, vector<10x128xf32>, vector<3x128xf32> -> vector<3x128xf32>
    %c0_15 = arith.constant 0 : index
    %c0_16 = arith.constant 0 : index
    %17 = vector.load %arg7[%c0_15, %c0_16] : memref<3x1xf32, #tpu.memory_space<vmem>>, vector<3x1xf32>
    %18 = vector.broadcast %17 : vector<3x1xf32> to vector<3x128xf32>
    %19 = arith.addf %16, %18 : vector<3x128xf32>
    %c0_17 = arith.constant 0 : index
    %c0_18 = arith.constant 0 : index
    %20 = vector.load %arg8[%c0_17, %c0_18] : memref<3x128xf32, #tpu.memory_space<vmem>>, vector<3x128xf32>
    tpu.vector_store %arg8[%c0_17, %c0_18], %19 {strides = array<i32>} : memref<3x128xf32, #tpu.memory_space<vmem>>, vector<3x128xf32>,
    return
  }
  func.func @transform_0(%arg0: i32) -> (i32, i32) {
    %c0_i32 = arith.constant 0 : i32
    %c0_i32_0 = arith.constant 0 : i32
    return %c0_i32, %arg0 : i32, i32
  }
  func.func @transform_1(%arg0: i32) -> (i32, i32) {
    %c0_i32 = arith.constant 0 : i32
    %c0_i32_0 = arith.constant 0 : i32
    %c0_i32_1 = arith.constant 0 : i32
    return %c0_i32, %c0_i32_0 : i32, i32
  }
  func.func @transform_2(%arg0: i32) -> (i32, i32) {
    %c0_i32 = arith.constant 0 : i32
    %c0_i32_0 = arith.constant 0 : i32
    %c0_i32_1 = arith.constant 0 : i32
    return %c0_i32, %c0_i32_0 : i32, i32
  }
  func.func @transform_3(%arg0: i32) -> (i32, i32) {
    %c0_i32 = arith.constant 0 : i32
    %c0_i32_0 = arith.constant 0 : i32
    %c0_i32_1 = arith.constant 0 : i32
    return %c0_i32, %c0_i32_0 : i32, i32
  }
  func.func @transform_4(%arg0: i32) -> (i32, i32) {
    %c0_i32 = arith.constant 0 : i32
    %c0_i32_0 = arith.constant 0 : i32
    %c0_i32_1 = arith.constant 0 : i32
    return %c0_i32, %c0_i32_0 : i32, i32
  }
  func.func @transform_5(%arg0: i32) -> (i32, i32) {
    %c0_i32 = arith.constant 0 : i32
    %c0_i32_0 = arith.constant 0 : i32
    %c0_i32_1 = arith.constant 0 : i32
    return %c0_i32, %c0_i32_0 : i32, i32
  }
  func.func @transform_6(%arg0: i32) -> (i32, i32) {
    %c0_i32 = arith.constant 0 : i32
    %c0_i32_0 = arith.constant 0 : i32
    %c0_i32_1 = arith.constant 0 : i32
    return %c0_i32, %c0_i32_0 : i32, i32
  }
  func.func @transform_7(%arg0: i32) -> (i32, i32) {
    %c0_i32 = arith.constant 0 : i32
    %c0_i32_0 = arith.constant 0 : i32
    return %c0_i32, %arg0 : i32, i32
  }
}

</mosaic_0001>

<bundles_post_ra>
// kernel: tpu_custom_call.1
= control target key start
LH: loop header
LB: loop body
LE: loop exit
PB: predicated region body
PF: predicated region fallthrough
CT: control target
= control target key end

     0   :  { %12 = vsyncpa [#allocation3], 0  ;;  %s964_s0 = inlined_call_operand.vmem [shape: f32[3,200], index: 0, kind: input, shape index: {}]   ;;  %s965_s1 = inlined_call_operand.vmem [shape: f32[10,3], index: 1, kind: input, shape index: {}]   ;;  %s966_s2 = inlined_call_operand.vmem [shape: f32[10,1], index: 2, kind: input, shape index: {}]   ;;  %s967_s3 = inlined_call_operand.vmem [shape: f32[10,10], index: 3, kind: input, shape index: {}]   ;;  %s968_s4 = inlined_call_operand.vmem [shape: f32[10,1], index: 4, kind: input, shape index: {}]   ;;  %s969_s5 = inlined_call_operand.vmem [shape: f32[3,10], index: 5, kind: input, shape index: {}]   ;;  %s970_s6 = inlined_call_operand.vmem [shape: f32[3,1], index: 6, kind: input, shape index: {}]   ;;  %s971_s7 = inlined_call_operand.hbm [shape: f32[3,200], index: 7, kind: output, shape index: {}]  }
   0x1   :  { %14 = vsyncpa [#allocation3 + $0x1], 0  ;;  %s833_s24 = smov 0   ;;  %s835_s25 = smov 0  }
   0x2   :  { %s837_s26 = smov 0   ;;  %s839_s27 = smov 0  }
   0x3 LB: > { %s854_s28 = sadd.s32 4294967295, %s787_s27   ;;  %s636_s29 = sadd.s32 4294967294, %s787_s27   ;;  %s787_s27 = sphi %s839_s27, %s977_s27   ;;  %s783_s26 = sphi %s837_s26, %s976_s26   ;;  %s779_s25 = sphi %s835_s25, %s975_s25   ;;  %s775_s24 = sphi %s833_s24, %s974_s24  }
   0x4   : > { %s858_s30 = sadd.s32 1, %s787_s27   ;;  %s179_s8 = sadd.s32 1, %s783_s26 }
   0x5   : > { %s176_s9 = ssub.s32 %s787_s27, %s858_s30  ;;  %p189_p0 = scmp.ne.s32.totalorder %s783_s26, %s779_s25 }
   0x6   : > { %p177_p1 = scmp.eq.s32.totalorder %s176_s9, 0  ;;  %p190_p2 = scmp.eq.s32.totalorder %s854_s28, 1 }
   0x7   : > { %p195_p3 = scmp.ne.s32.totalorder %s779_s25, %s775_s24  ;;  %p196_p4 = scmp.eq.s32.totalorder %s636_s29, 1 }
   0x8   : > { %s869_s10 = scalar_select %p177_p1, %s783_s26, %s179_s8  }
   0x9   : > { %p871_p5 = por %p190_p2, %p189_p0  ;;  %p875_p6 = por %p196_p4, %p195_p3 }
   0xa   : > { %p639_p7 = scmp.ge.s32.totalorder %s787_s27, 1  ;;  %p239_p8 = scmp.lt.s32.totalorder %s787_s27, 3 }
   0xc   : > { %p240_p9 = pnand %p639_p7, %p239_p8 }
   0xd   : > { %p270_p10 = scmp.lt.s32.totalorder (!%p240_p9), %s854_s28, 1  ;;  %s267_s29 = sand.u32 (!%p240_p9), 1, %s779_s25  }
   0xe   : > { %243 = sbr.rel (%p240_p9) target bundleno = 635 (0x27b), region = 48  ;;  %s640_s8 = sshll.u32 (!%p240_p9), %s267_s29, 2 }
   0xf   : > { %s651_s9 = sshll.u32 (!%p240_p9), %s854_s28, 6  ;;  %s269_s13 = scalar_lea.vmem (!%p240_p9), [#allocation2], %s640_s8 }
  0x10   : > { %s577_s14 = sshll.u32 (!%p240_p9), %s269_s13, 4  ;;  %s578_s14 = int_to_ptr.vmem [resolvable:$true] %s577_s14 }
  0x11   : > { %s727_s19 = scalar_lea.vmem (!%p240_p9), %s578_s14, 64 }
  0x12   : > { %p728_p11 = scmp.ne.s32.totalorder (!%p240_p9), %s578_s14, %s727_s19 }
  0x13   : > { %v275_v0 = vld [vmem:[%s965_s1] sm:$0xff]  ;;  %vm289_vm0 = vcmask 23552   ;;  %v278_v1 = vld [vmem:[%s966_s2 + $0x8] sm:$0x3]  ;;  %s271_s17 = scalar_select %p270_p10, %s854_s28, 1  ;;  %v789_v2 = vmov 0  }
  0x14   : > { %666 = vmatprep.mubr.msk.f32.mxu0 %vm289_vm0, %v275_v0  ;;  %725 = vset.pattern.permute.xlu0 %v789_v2  ;;  %vm296_vm1 = vcmask 1042432   ;;  %v277_v3 = vld [vmem:[%s966_s2] sm:$0xff]  ;;  %v276_v5 = vld [vmem:[%s965_s1 + $0x8] sm:$0x3]  ;;  %vm391_vm2 = vcmask 80896   ;;  %vm398_vm3 = vcmask 1041408   ;;  %p729_p12 = pnand %p728_p11, %p871_p5 }
  0x15   : > { %726 = vset.pattern.permute.xlu1 %v789_v2  ;;  %286 = vperm.xlu0 %725, %v278_v1   ;;  %s641_s18 = sshll.u32 %s271_s17, 2  ;;  %v480_v6 = vld [vmem:[%s970_s6] sm:$0x7]  ;;  %v380_v8 = vld [vmem:[%s968_s4 + $0x8] sm:$0x3]  ;;  %v790_v19 = vmov 0.0   ;;  %s929_s17 = scalar_lea.hbm %s971_s7, %s651_s9 }
  0x16   : > { %s273_s23 = scalar_lea.vmem %s964_s0, %s641_s18  ;;  %v377_v7 = vld [vmem:[%s967_s3] sm:$0xff]  ;;  %388 = vperm.xlu1 %726, %v380_v8   ;;  %v378_v18 = vld [vmem:[%s967_s3 + $0x8] sm:$0x3]  ;;  %vm791_vm4 = vmmov 0   ;;  %s564_s18 = scalar_lea.sflag [#allocation3], %s267_s29 }
  0x17   : > { %v274_v4 = vld [vmem:[%s273_s23] sm:$0x7]  ;;  %673 = vmatprep.mubr.msk.f32.mxu1 %vm391_vm2, %v377_v7  ;;  %p730_p13 = pneg %p729_p12  ;;  %s792_s28 = smov [#allocation2]  }
  0x18   : > { %664 = vmatprep.subr.msk.mxu0 %vm296_vm1, %v274_v4  ;;  %v379_v9 = vld [vmem:[%s968_s4] sm:$0xff]  ;;  %s731_s20 = sshll.u32 %s792_s28, 4  ;;  %s732_s20 = int_to_ptr.vmem [resolvable:$false] %s731_s20 }
  0x19   : > { %281 = vperm.xlu0 %725, %v277_v3   ;;  %665 = vmatpush3.msk.msra.mxu0 %vm296_vm1, %v274_v4  ;;  %v479_v28 = vld [vmem:[%s969_s5] sm:$0x7]  ;;  %s733_s21 = scalar_lea.vmem %s732_s20, 128  ;;  %p734_p0 = scmp.lt.s32.totalorder %s578_s14, %s732_s20 }
  0x1a   : > { %667 = vmatmul.mubr.msk.f32.vlgmr.msra.gmra.mxu0 %vm289_vm0, %v276_v5  ;;  %383 = vperm.xlu1 %726, %v379_v9   ;;  %p735_p1 = scmp.lt.s32.totalorder %s733_s21, %s727_s19 }
  0x1b   : > { %676 = vmatprep.subr.mxu0 %v790_v19  ;;  %680 = vmatprep.mubr.msk.f32.mxu0 %vm791_vm4, %v790_v19 }
  0x1c   : > { %p736_p2 = por %p735_p1, %p734_p0 }
  0x1d   : > { %483 = vperm.xlu0 %725, %v480_v6  }
  0x1e   : > { %p737_p3 = pnand %p736_p2, %p730_p13 }
  0x90   : > { %v287_v10 = vpop.permute.xlu0 %286 }
  0x91   : > { %v389_v20 = vpop.permute.xlu1 %388 }
  0x94   : > { %v282_v13 = vpop.permute.xlu0 %281 }
  0x95   : > { %v384_v23 = vpop.permute.xlu1 %383 }
  0x98   : > { %v484_v29 = vpop.permute.xlu0 %483 }
  0xda   : > { %v668_v11 = vpop.f32.mrf.mxu0 }
  0xdb   : > { %v372_v12 = vadd.f32 %v668_v11, %v287_v10 }
  0xdc   : > { %v366_v14 = vpop.f32.mrf.mxu0 }
  0xdd   : > { %v376_v15 = vmax.f32 %v372_v12, 0.0  ;;  %v367_v16 = vadd.f32 %v366_v14, %v282_v13 }
  0xdf   : > { %v375_v17 = vmax.f32 %v367_v16, 0.0  ;;  %669 = vmatprep.subr.msk.mxu1 %vm398_vm3, %v376_v15 }
  0xe0   : > { %670 = vmatpush3.msk.msra.mxu1 %vm398_vm3, %v376_v15 }
  0xe1   : > { %671 = vmatprep.subr.mxu1 %v375_v17 }
  0xe2   : > { %672 = vmatpush3.msra.mxu1 %v375_v17 }
  0xe3   : > { %674 = vmatmul.mubr.msk.f32.vlgmr.msra.gmra.mxu1 %vm391_vm2, %v378_v18 }
 0x1a3   : > { %v675_v21 = vpop.f32.mrf.mxu1 }
 0x1a4   : > { %v474_v22 = vadd.f32 %v675_v21, %v389_v20 }
 0x1a5   : > { %v468_v24 = vpop.f32.mrf.mxu1 }
 0x1a6   : > { %v478_v25 = vmax.f32 %v474_v22, 0.0  ;;  %v469_v26 = vadd.f32 %v468_v24, %v384_v23 }
 0x1a8   : > { %v477_v27 = vmax.f32 %v469_v26, 0.0  ;;  %677 = vmatpush3.msk.msra.mxu0 %vm398_vm3, %v478_v25 }
 0x1a9   : > { %678 = vmatprep.subr.mxu0 %v790_v19 }
 0x1aa   : > { %679 = vmatpush3.msra.mxu0 %v477_v27 }
 0x1ab   : > { %681 = vmatmul.mubr.msk.f32.vlgmr.msra.gmra.mxu0 %vm391_vm2, %v479_v28 }
 0x26b   : > { %v558_v30 = vpop.f32.mrf.mxu0 }
 0x26c   : > { %v559_v31 = vadd.f32 %v558_v30, %v484_v29 }
 0x26d   : > { %v682_v32 = vpop.f32.mrf.mxu0 }
 0x26e   : > { %562 = vst [vmem:[%s269_s13] sm:$0x7] %v559_v31 }
 0x26f   : > { %740 = shalt.err (!%p737_p3)
}
 0x270   : > { %s741_s22 = scalar_lea.hbm %s929_s17, 64  ;;  %s745_s8 = scalar_lea.hbm %s971_s7, 128 }
 0x271   : > { %p742_p4 = scmp.ne.s32.totalorder %s929_s17, %s741_s22  ;;  %p746_p9 = scmp.lt.s32.totalorder %s929_s17, %s971_s7 }
 0x272   : > { %p747_p10 = scmp.lt.s32.totalorder %s745_s8, %s741_s22 }
 0x273   : > { %p743_p7 = pnand %p742_p4, %p871_p5 }
 0x274   : > { %p748_p11 = por %p747_p10, %p746_p9 }
 0x275   : > { %p744_p8 = pneg %p743_p7 }
 0x277   : > { %p749_p12 = pnand %p748_p11, %p744_p8 }
 0x279   : > { %752 = shalt.err (!%p749_p12)
}
 0x27a   : > { %683 = dma.vmem_to_hbm [thread:$0]  (%p871_p5), %s578_s14, 64, %s929_s17, %s564_s18  }
 0x27b PF: > { %p689_p13 = scmp.ge.s32.totalorder %s787_s27, 2  ;;  %s589_s15 = sand.u32 1, %s775_s24  }
 0x27c   : > { %s590_s16 = scalar_lea.sflag [#allocation3], %s589_s15 }
 0x27d   : > { %p686_p0 = pnand %p689_p13, %p875_p6 }
 0x27f   : > { %p687_p1 = pneg %p686_p0 }
 0x281   : > { %770 = dma.done.wait (%p687_p1), %s590_s16, 64  }
 0x282   : > { %772 = vsyncadd (%p687_p1), %s590_s16, 4294967232  ;;  %p17_p2 = scmp.ge.s32.totalorder %s858_s30, 4   ;;  %s974_s24 = smov %s779_s25 }
 0x283   : > { %s975_s25 = smov %s783_s26  ;;  %s976_s26 = smov %s869_s10 }
 0x284   : > { %s977_s27 = smov %s858_s30  ;;  %19 = sbr.rel (!%p17_p2) target bundleno = 3 (0x3), region = 83 }
 0x289   :  { %595 = vsyncpa [#allocation3], 1 }
 0x28a   :  { %597 = vsyncpa [#allocation3 + $0x1], 1 }

</bundles_post_ra>
